<compile_context>
chip_gen: v5e
topology: v5e:2x2
jax: 0.10.0
libtpu: 0.0.40
codegen_flags: <defaults>
</compile_context>

<pallas_src>
import functools

import jax
import jax.numpy as jnp
from jax.experimental import pallas as pl
from jax.experimental.pallas import tpu as pltpu


# ---------------------------------------------------------------------------
# Kernels (channels-first streaming: x block is (dim_in, tile_s))
# ---------------------------------------------------------------------------
def _fcl_train_kernel(x_ref, wt_ref, b_ref, o_ref):
    """Training path: fused Linear only, written directly in PyTorch's
    (spatial, class) order.

    x_ref : (1, dim_in, tile_s)        compute dtype (bf16 by default)
    wt_ref: (num_classes, dim_in)      fused weight  (= w2 @ w1)
    b_ref : (num_classes, 1)  f32      fused bias    (= w2 @ b1 + b2)
    o_ref : (1, tile_s, num_classes)
    """
    y = jnp.dot(wt_ref[...], x_ref[0], preferred_element_type=jnp.float32)
    y = y + b_ref[...]                                   # (nc, tile_s) f32
    # In-kernel XLU transpose so the output goes straight to (N, S, nc) in
    # HBM -> no full-size epilogue transpose / extra HBM round trip.
    o_ref[...] = jnp.transpose(y).astype(o_ref.dtype).reshape(o_ref.shape)


def _fcl_eval_kernel(inv_s, s_valid, tile_s, tiles_per_split, needs_mask,
                     x_ref, wt_ref, b_ref, o_ref, acc_ref):
    """Eval path: fused Linear -> softmax over classes -> mean over S.

    Grid = (n_split, N, tiles_per_split); the S reduction is the LAST axis
    and is marked 'arbitrary'; the accumulator is zeroed at t==0 and the
    (per-split) partial mean is stored on the last S tile.
    """
    t = pl.program_id(2)

    @pl.when(t == 0)
    def _():
        acc_ref[...] = jnp.zeros_like(acc_ref)

    y = jnp.dot(wt_ref[...], x_ref[0], preferred_element_type=jnp.float32)
    y = y + b_ref[...]                                   # (nc, tile_s)
    y = y - jnp.max(y, axis=0, keepdims=True)            # stabilized softmax
    e = jnp.exp(y)
    denom = jnp.sum(e, axis=0, keepdims=True)            # (1, tile_s)
    p = e * pl.reciprocal(denom, approx=True)            # EUP slot, ~free
    if needs_mask:  # static python bool: only emitted when S was padded
        col0 = (pl.program_id(0) * tiles_per_split + t) * tile_s
        cols = col0 + jax.lax.broadcasted_iota(jnp.int32, p.shape, 1)
        p = jnp.where(cols < s_valid, p, 0.0)
    acc_ref[...] += jnp.sum(p, axis=1, keepdims=True)    # (nc, 1)

    @pl.when(t == pl.num_programs(2) - 1)
    def _():
        o_ref[...] = (acc_ref[...] * inv_s).astype(o_ref.dtype).reshape(o_ref.shape)


# ---------------------------------------------------------------------------
# Tiling helpers
# ---------------------------------------------------------------------------
def _round_up(x, m):
    return -(-x // m) * m


def _vmem_capacity_bytes():
    try:
        return int(pltpu.get_tpu_info().vmem_capacity_bytes)
    except Exception:
        return 64 << 20  # conservative fallback: v7x per-TensorCore VMEM


def _plan_s_tiling(s, per_s_vmem_bytes, *, n_split=1, max_tile=32768):
    """Pick tile_s (multiple of 128) so all double-buffered per-step blocks
    fit in ~half the chip VMEM; pad S so n_tiles * tile_s covers it."""
    vmem_cap = _vmem_capacity_bytes()
    # ~32 MiB budget on v7x (64 MiB VMEM), ~64 MiB on v5e/v6e (128 MiB VMEM).
    budget = max(16 << 20, min(vmem_cap // 2, 64 << 20))
    cap = max(128, min(max_tile, budget // max(per_s_vmem_bytes, 1)))
    cap = (cap // 128) * 128
    s128 = _round_up(s, 128)
    n_tiles = -(-s128 // cap)
    if n_split > 1:
        n_tiles = _round_up(max(n_tiles, n_split), n_split)
    tile = _round_up(-(-s128 // n_tiles), 128)
    return tile, n_tiles, tile * n_tiles, vmem_cap


# ---------------------------------------------------------------------------
# Wrapper
# ---------------------------------------------------------------------------
def fully_convolutional_linear_2(x, params, *, training=False, act_func="softmax",
                                 compute_dtype=jnp.bfloat16):
    """x: (N, C, T, H, W) float32.  Returns (N, num_classes) in eval mode,
    (N, T*H*W*num_classes) in training mode (matching the PyTorch module)."""
    if act_func != "softmax":
        # TODO(synk): sigmoid activation branch not implemented.
        raise NotImplementedError(act_func)

    w1, b1, w2, b2 = params["w1"], params["b1"], params["w2"], params["b2"]
    N, C, T, H, W = x.shape
    dim_in = C
    num_classes = w2.shape[0]
    S = T * H * W
    out_dtype = x.dtype

    # Channels-first view of the contiguous NCTHW tensor: pure reshape (free),
    # then cast the big streamed operand to bf16 (halves HBM read traffic).
    x_cf = x.reshape(N, dim_in, S).astype(compute_dtype)

    # Algebraic fusion of the two Linears (nothing sits between them):
    #   y = (x @ w1.T + b1) @ w2.T + b2 = x @ (w2 @ w1).T + (w2 @ b1 + b2)
    w_fused_t = jnp.dot(w2, w1).astype(compute_dtype)            # (nc, dim_in)
    b_fused = (jnp.dot(w2, b1) + b2).reshape(num_classes, 1)     # f32 (nc, 1)

    in_itemsize = jnp.dtype(compute_dtype).itemsize
    # VMEM bytes per unit of tile_s for the double-buffered blocks, accounting
    # for (8,128)/(16,128) tile padding (narrow-minor-dim training output).
    sub = 8 * (4 // in_itemsize)
    x_per_s = 32 * (-(-dim_in // sub))
    per_s = 2 * x_per_s
    if training:
        per_s += 2 * 512 * (-(-num_classes // 128))

    # Eval with a single batch element: split the S reduction over a leading
    # parallel axis so both TensorCores of a v7x chip get work.
    n_split = 2 if (not training and N == 1 and _round_up(S, 128) >= 256) else 1

    tile_s, n_tiles, s_pad, vmem_cap = _plan_s_tiling(S, per_s, n_split=n_split)
    if s_pad != S:
        x_cf = jnp.pad(x_cf, ((0, 0), (0, 0), (0, s_pad - S)))

    needed = per_s * tile_s + (1 << 20)   # blocks + weights/bias/scratch slack
    vmem_limit = int(min(vmem_cap * 3 // 4, max(needed + (8 << 20), 32 << 20)))

    flops = 2 * N * S * dim_in * num_classes
    x_bytes = N * dim_in * s_pad * in_itemsize

    if training:
        x_spec = pl.BlockSpec((1, dim_in, tile_s), lambda n, t: (n, 0, t))
        w_spec = pl.BlockSpec((num_classes, dim_in), lambda n, t: (0, 0))
        b_spec = pl.BlockSpec((num_classes, 1), lambda n, t: (0, 0))
        out = pl.pallas_call(
            _fcl_train_kernel,
            out_shape=jax.ShapeDtypeStruct((N, s_pad, num_classes), out_dtype),
            grid_spec=pltpu.PrefetchScalarGridSpec(
                num_scalar_prefetch=0,
                grid=(N, n_tiles),
                in_specs=[x_spec, w_spec, b_spec],
                out_specs=pl.BlockSpec((1, tile_s, num_classes),
                                       lambda n, t: (n, t, 0)),
            ),
            compiler_params=pltpu.CompilerParams(
                dimension_semantics=("parallel", "parallel"),
                vmem_limit_bytes=vmem_limit),
            cost_estimate=pl.CostEstimate(
                flops=flops, transcendentals=0,
                bytes_accessed=x_bytes + N * s_pad * num_classes
                * jnp.dtype(out_dtype).itemsize),
        )(x_cf, w_fused_t, b_fused)
        if s_pad != S:
            out = out[:, :S, :]
        return out.reshape(N, S * num_classes)
    else:
        tiles_per_split = n_tiles // n_split
        x_spec = pl.BlockSpec((1, dim_in, tile_s),
                              lambda c, n, t: (n, 0, c * tiles_per_split + t))
        w_spec = pl.BlockSpec((num_classes, dim_in), lambda c, n, t: (0, 0))
        b_spec = pl.BlockSpec((num_classes, 1), lambda c, n, t: (0, 0))
        kernel = functools.partial(
            _fcl_eval_kernel, 1.0 / S, S, tile_s, tiles_per_split, s_pad != S)
        out = pl.pallas_call(
            kernel,
            out_shape=jax.ShapeDtypeStruct((n_split, N, num_classes, 1), out_dtype),
            grid_spec=pltpu.PrefetchScalarGridSpec(
                num_scalar_prefetch=0,
                grid=(n_split, N, tiles_per_split),
                in_specs=[x_spec, w_spec, b_spec],
                out_specs=pl.BlockSpec((1, 1, num_classes, 1),
                                       lambda c, n, t: (c, n, 0, 0)),
                scratch_shapes=[pltpu.VMEM((num_classes, 1), jnp.float32)],
            ),
            compiler_params=pltpu.CompilerParams(
                dimension_semantics=("parallel", "parallel", "arbitrary"),
                vmem_limit_bytes=vmem_limit),
            cost_estimate=pl.CostEstimate(
                flops=flops, transcendentals=N * s_pad * num_classes,
                bytes_accessed=x_bytes + n_split * N * num_classes * 4),
        )(x_cf, w_fused_t, b_fused)
        # Sum the per-split partial means (each already scaled by 1/S).
        return jnp.sum(out.astype(jnp.float32), axis=0).reshape(
            N, num_classes).astype(out_dtype)


# ---------------------------------------------------------------------------
# Deterministic parameter init (PyTorch nn.Linear shapes: weight (out, in))
# ---------------------------------------------------------------------------
def init_params(key, dim_in, dim_mid, num_classes):
    k1, k2, k3, k4 = jax.random.split(key, 4)
    bound1 = 1.0 / jnp.sqrt(dim_in)
    bound2 = 1.0 / jnp.sqrt(dim_mid)
    return {
        "w1": jax.random.uniform(k1, (dim_mid, dim_in), jnp.float32, -bound1, bound1),
        "b1": jax.random.uniform(k2, (dim_mid,), jnp.float32, -bound1, bound1),
        "w2": jax.random.uniform(k3, (num_classes, dim_mid), jnp.float32, -bound2, bound2),
        "b2": jax.random.uniform(k4, (num_classes,), jnp.float32, -bound2, bound2),
    }


if __name__ == "__main__":
    import numpy as np

    key = jax.random.PRNGKey(0)
    k_x, k_p = jax.random.split(key)

    N, dim_in, T, H, W = 2, 32, 4, 8, 8
    dim_mid, num_classes = 16, 8

    x = jax.random.normal(k_x, (N, dim_in, T, H, W), jnp.float32)
    params = init_params(k_p, dim_in, dim_mid, num_classes)

    # Pure-JAX reference mirroring the PyTorch module (f32 end to end).
    def ref(xx, training):
        xt = jnp.transpose(xx, (0, 2, 3, 4, 1))
        y = xt @ params["w1"].T + params["b1"]
        y = y @ params["w2"].T + params["b2"]
        if not training:
            y = jax.nn.softmax(y, axis=4)
            y = y.mean(axis=(1, 2, 3))
        return y.reshape(y.shape[0], -1)

    # Eval-mode forward (module.eval(): softmax + spatial mean).
    out_eval = fully_convolutional_linear_2(x, params, training=False)
    jax.block_until_ready(out_eval)
    assert out_eval.shape == (N, num_classes)
    np.testing.assert_allclose(np.asarray(out_eval), np.asarray(ref(x, False)),
                               rtol=2e-2, atol=2e-3)

    # Eval-mode with batch 1: exercises the S-split (megacore) grid path.
    out_eval1 = fully_convolutional_linear_2(x[:1], params, training=False)
    jax.block_until_ready(out_eval1)
    assert out_eval1.shape == (1, num_classes)
    np.testing.assert_allclose(np.asarray(out_eval1), np.asarray(ref(x[:1], False)),
                               rtol=2e-2, atol=2e-3)

    # Training-mode forward (linears only, flattened in (s, class) order).
    out_train = fully_convolutional_linear_2(x, params, training=True)
    jax.block_until_ready(out_train)
    assert out_train.shape == (N, T * H * W * num_classes)
    np.testing.assert_allclose(np.asarray(out_train), np.asarray(ref(x, True)),
                               rtol=2e-2, atol=2e-2)

    print("KERNEL_OK")
</pallas_src>

<mosaic_0001>
module attributes {stable_mosaic.version = 11 : i64} {
  func.func @_fcl_eval_kernel(%arg0: i32, %arg1: i32, %arg2: i32, %arg3: memref<1x32x256xbf16, #tpu.memory_space<vmem>>, %arg4: memref<8x32xbf16, #tpu.memory_space<vmem>>, %arg5: memref<8x1xf32, #tpu.memory_space<vmem>>, %arg6: memref<1x1x8x1xf32, #tpu.memory_space<vmem>>, %arg7: memref<8x1xf32, #tpu.memory_space<vmem>>) attributes {dimension_semantics = [#tpu.dimension_semantics<parallel>, #tpu.dimension_semantics<parallel>, #tpu.dimension_semantics<arbitrary>], iteration_bounds = array<i64: 1, 2, 1>, scalar_prefetch = 0 : i64, scratch_operands = 1 : i64, tpu.core_type = #tpu.core_type<tc>, window_params = [{transform_indices = @transform_0, window_bounds = array<i64: 1, 32, 256>}, {pipeline_mode = #tpu.pipeline_mode<synchronous>, transform_indices = @transform_1, window_bounds = array<i64: 8, 32>}, {pipeline_mode = #tpu.pipeline_mode<synchronous>, transform_indices = @transform_2, window_bounds = array<i64: 8, 1>}, {transform_indices = @transform_3, window_bounds = array<i64: 1, 1, 8, 1>}]} {
    %c0_i32 = arith.constant 0 : i32
    %0 = arith.cmpi eq, %arg2, %c0_i32 : i32
    %1 = arith.extui %0 : i1 to i32
    %c0_i32_0 = arith.constant 0 : i32
    %2 = arith.cmpi ne, %1, %c0_i32_0 : i32
    scf.if %2 {
      %cst_16 = arith.constant 0.000000e+00 : f32
      %28 = vector.broadcast %cst_16 : f32 to vector<8x1xf32>
      %c0_17 = arith.constant 0 : index
      %c0_18 = arith.constant 0 : index
      %29 = vector.load %arg7[%c0_17, %c0_18] : memref<8x1xf32, #tpu.memory_space<vmem>>, vector<8x1xf32>
      tpu.vector_store %arg7[%c0_17, %c0_18], %28 {strides = array<i32>} : memref<8x1xf32, #tpu.memory_space<vmem>>, vector<8x1xf32>,
    } else {
    }
    %c0 = arith.constant 0 : index
    %c0_1 = arith.constant 0 : index
    %3 = vector.load %arg4[%c0, %c0_1] : memref<8x32xbf16, #tpu.memory_space<vmem>>, vector<8x32xbf16>
    %c0_2 = arith.constant 0 : index
    %c0_3 = arith.constant 0 : index
    %c0_4 = arith.constant 0 : index
    %4 = vector.load %arg3[%c0_2, %c0_3, %c0_4] : memref<1x32x256xbf16, #tpu.memory_space<vmem>>, vector<1x32x256xbf16>
    %5 = vector.shape_cast %4 : vector<1x32x256xbf16> to vector<32x256xbf16>
    %cst = arith.constant dense<0.000000e+00> : vector<8x256xf32>
    %6 = tpu.matmul %3, %5, %cst {dimension_numbers = #tpu.dot_dimension_numbers<[1], [0], [0], [1], [0, 0, 1, 1], [], []>} : vector<8x32xbf16>, vector<32x256xbf16>, vector<8x256xf32> -> vector<8x256xf32>
    %c0_5 = arith.constant 0 : index
    %c0_6 = arith.constant 0 : index
    %7 = vector.load %arg5[%c0_5, %c0_6] : memref<8x1xf32, #tpu.memory_space<vmem>>, vector<8x1xf32>
    %8 = vector.broadcast %7 : vector<8x1xf32> to vector<8x256xf32>
    %9 = arith.addf %6, %8 : vector<8x256xf32>
    %cst_7 = arith.constant dense<0xFF800000> : vector<256xf32>
    %10 = vector.multi_reduction <maximumf>, %9, %cst_7 [0] : vector<8x256xf32> to vector<256xf32>
    %11 = vector.shape_cast %10 : vector<256xf32> to vector<1x256xf32>
    %12 = vector.broadcast %11 : vector<1x256xf32> to vector<8x256xf32>
    %13 = arith.subf %9, %12 : vector<8x256xf32>
    %14 = math.exp %13 : vector<8x256xf32>
    %cst_8 = arith.constant dense<0.000000e+00> : vector<256xf32>
    %15 = vector.multi_reduction <add>, %14, %cst_8 [0] : vector<8x256xf32> to vector<256xf32>
    %16 = vector.shape_cast %15 : vector<256xf32> to vector<1x256xf32>
    %17 = tpu.reciprocal %16 {approx = true} : vector<1x256xf32> -> vector<1x256xf32>
    %18 = vector.broadcast %17 : vector<1x256xf32> to vector<8x256xf32>
    %19 = arith.mulf %14, %18 : vector<8x256xf32>
    %c0_9 = arith.constant 0 : index
    %c0_10 = arith.constant 0 : index
    %20 = vector.load %arg7[%c0_9, %c0_10] : memref<8x1xf32, #tpu.memory_space<vmem>>, vector<8x1xf32>
    %cst_11 = arith.constant dense<0.000000e+00> : vector<8xf32>
    %21 = vector.multi_reduction <add>, %19, %cst_11 [1] : vector<8x256xf32> to vector<8xf32>
    %22 = vector.shape_cast %21 : vector<8xf32> to vector<8x1xf32>
    %23 = arith.addf %20, %22 : vector<8x1xf32>
    %c0_12 = arith.constant 0 : index
    %c0_13 = arith.constant 0 : index
    %24 = vector.load %arg7[%c0_12, %c0_13] : memref<8x1xf32, #tpu.memory_space<vmem>>, vector<8x1xf32>
    tpu.vector_store %arg7[%c0_12, %c0_13], %23 {strides = array<i32>} : memref<8x1xf32, #tpu.memory_space<vmem>>, vector<8x1xf32>,
    %c0_i32_14 = arith.constant 0 : i32
    %25 = arith.cmpi eq, %arg2, %c0_i32_14 : i32
    %26 = arith.extui %25 : i1 to i32
    %c0_i32_15 = arith.constant 0 : i32
    %27 = arith.cmpi ne, %26, %c0_i32_15 : i32
    scf.if %27 {
      %c0_16 = arith.constant 0 : index
      %c0_17 = arith.constant 0 : index
      %28 = vector.load %arg7[%c0_16, %c0_17] : memref<8x1xf32, #tpu.memory_space<vmem>>, vector<8x1xf32>
      %cst_18 = arith.constant 3.906250e-03 : f32
      %29 = vector.broadcast %cst_18 : f32 to vector<8x1xf32>
      %30 = arith.mulf %28, %29 : vector<8x1xf32>
      %31 = vector.shape_cast %30 : vector<8x1xf32> to vector<1x1x8x1xf32>
      %c0_19 = arith.constant 0 : index
      %c0_20 = arith.constant 0 : index
      %c0_21 = arith.constant 0 : index
      %c0_22 = arith.constant 0 : index
      %32 = vector.load %arg6[%c0_19, %c0_20, %c0_21, %c0_22] : memref<1x1x8x1xf32, #tpu.memory_space<vmem>>, vector<1x1x8x1xf32>
      tpu.vector_store %arg6[%c0_19, %c0_20, %c0_21, %c0_22], %31 {strides = array<i32>} : memref<1x1x8x1xf32, #tpu.memory_space<vmem>>, vector<1x1x8x1xf32>,
    } else {
    }
    return
  }
  func.func @transform_0(%arg0: i32, %arg1: i32, %arg2: i32) -> (i32, i32, i32) {
    %c1_i32 = arith.constant 1 : i32
    %0 = arith.muli %arg0, %c1_i32 : i32
    %1 = arith.addi %0, %arg2 : i32
    %c0_i32 = arith.constant 0 : i32
    %c0_i32_0 = arith.constant 0 : i32
    return %arg1, %c0_i32, %1 : i32, i32, i32
  }
  func.func @transform_1(%arg0: i32, %arg1: i32, %arg2: i32) -> (i32, i32) {
    %c0_i32 = arith.constant 0 : i32
    %c0_i32_0 = arith.constant 0 : i32
    %c0_i32_1 = arith.constant 0 : i32
    return %c0_i32, %c0_i32_0 : i32, i32
  }
  func.func @transform_2(%arg0: i32, %arg1: i32, %arg2: i32) -> (i32, i32) {
    %c0_i32 = arith.constant 0 : i32
    %c0_i32_0 = arith.constant 0 : i32
    %c0_i32_1 = arith.constant 0 : i32
    return %c0_i32, %c0_i32_0 : i32, i32
  }
  func.func @transform_3(%arg0: i32, %arg1: i32, %arg2: i32) -> (i32, i32, i32, i32) {
    %c0_i32 = arith.constant 0 : i32
    %c0_i32_0 = arith.constant 0 : i32
    %c0_i32_1 = arith.constant 0 : i32
    return %arg0, %arg1, %c0_i32, %c0_i32_0 : i32, i32, i32, i32
  }
}

</mosaic_0001>

<bundles_post_ra>
// kernel: tpu_custom_call.1
= control target key start
LH: loop header
LB: loop body
LE: loop exit
PB: predicated region body
PF: predicated region fallthrough
CT: control target
= control target key end

     0   :  { %8 = vsyncpa [#allocation4], 0  ;;  %s746_s0 = inlined_call_operand.hbm [shape: bf16[2,32,256], index: 0, kind: input, shape index: {}]   ;;  %s747_s1 = inlined_call_operand.vmem [shape: bf16[8,32], index: 1, kind: input, shape index: {}]   ;;  %s748_s2 = inlined_call_operand.vmem [shape: f32[8,1], index: 2, kind: input, shape index: {}]   ;;  %s749_s3 = inlined_call_operand.vmem [shape: f32[1,2,8,1], index: 3, kind: output, shape index: {}]  }
   0x1   :  { %10 = vsyncpa [#allocation4 + $0x1], 0  ;;  %s649_s12 = smov 0   ;;  %s651_s13 = smov 0  }
   0x2   :  { %s653_s14 = smov 0   ;;  %s655_s15 = smov 0  }
   0x3   :  { %s657_s16 = smov 0   ;;  %s659_s17 = smov 0  }
   0x4 LB: > { %s440_s18 = sadd.s32 4294967295, %s623_s17   ;;  %s31_s19 = sadd.s32 1, %s619_s16  ;;  %s623_s17 = sphi %s659_s17, %s16_s17   ;;  %s619_s16 = sphi %s657_s16, %s756_s16   ;;  %s615_s15 = sphi %s655_s15, %s755_s15   ;;  %s611_s14 = sphi %s653_s14, %s754_s14   ;;  %s607_s13 = sphi %s651_s13, %s753_s13   ;;  %s603_s12 = sphi %s649_s12, %s752_s12  }
   0x5   : > { %p33_p0 = scmp.ge.s32.totalorder %s31_s19, 2  ;;  %s46_s20 = sadd.s32 1, %s611_s14 }
   0x6   : > { %p53_p1 = scmp.ne.s32.totalorder %s611_s14, %s607_s13  ;;  %p54_p2 = scmp.eq.s32.totalorder %s623_s17, 0 }
   0x7   : > { %s758_s19 = smov (%p33_p0, %s31_s19), 0  ;;  %p59_p4 = scmp.ne.s32.totalorder %s607_s13, %s603_s12 }
   0x8   : > { %p685_p3 = por %p54_p2, %p53_p1  ;;  %s41_s22 = ssub.s32 %s619_s16, %s758_s19 }
   0x9   : > { %p60_p5 = scmp.eq.s32.totalorder %s440_s18, 0  ;;  %p44_p6 = scmp.eq.s32.totalorder %s41_s22, 0 }
   0xa   : > { %p481_p8 = scmp.lt.s32.totalorder %s623_s17, 2  ;;  %s159_s25 = sand.u32 1, %s611_s14  }
   0xb   : > { %p692_p7 = por %p60_p5, %p59_p4  ;;  %s470_s26 = sshll.u32 %s619_s16, 5 }
   0xc   : > { %s698_s24 = scalar_select %p44_p6, %s611_s14, %s46_s20  }
   0xd   : > { %s444_s27 = sshll.u32 %s159_s25, 5  ;;  %s171_s30 = scalar_lea.hbm %s746_s0, %s470_s26 }
   0xe   : > { %s172_s4 = sshll.u32 %s171_s30, 4  ;;  %s163_s5 = scalar_lea.vmem [#allocation3], %s444_s27  ;;  %s173_s4 = int_to_ptr.hbm [resolvable:$true] %s172_s4 }
   0xf   : > { %s174_s6 = sshll.u32 %s163_s5, 4  ;;  %p478_p9 = pnand %p481_p8, %p685_p3  ;;  %s175_s6 = int_to_ptr.vmem [resolvable:$true] %s174_s6 }
  0x10   : > { %p447_p10 = scmp.ge.s32.totalorder %s623_s17, 1  ;;  %p182_p11 = scmp.lt.s32.totalorder %s623_s17, 3 }
  0x11   : > { %s160_s7 = scalar_lea.sflag [#allocation4], %s159_s25  ;;  %s625_s8 = smov 128  }
  0x12   : > { %s626_s9 = smov 8   ;;  %p183_p12 = pnand %p447_p10, %p182_p11 }
  0x13   : > { %480 = dma.hbm_to_vmem [thread:$0]  (!%p478_p9), %s173_s4, 512, %s175_s6, %s160_s7, %s625_s8, %s625_s8, %s626_s9  }
  0x14   : > { %186 = sbr.rel (%p183_p12) target bundleno = 340 (0x154), region = 32  ;;  %s188_s10 = sand.u32 (!%p183_p12), 1, %s607_s13  }
  0x15   : > { %s448_s11 = sshll.u32 (!%p183_p12), %s188_s10, 5  ;;  %s189_s12 = scalar_lea.sflag (!%p183_p12), [#allocation4], %s188_s10 }
  0x16   : > { %s192_s18 = scalar_lea.vmem (!%p183_p12), [#allocation3], %s448_s11 }
  0x19   : > { %598 = dma.done.wait (%p692_p7), %s189_s12, 512  }
  0x1a   : > { %600 = vsyncadd (%p692_p7), %s189_s12, 4294966784  ;;  %v627_v0 = vmov 0   ;;  %v460_v1 = vld [vmem:[%s192_s18 + $0x10] sm:$0xf]  ;;  %v474_v2 = vld [vmem:[%s192_s18 + $0x14] sm:$0xf0] }
  0x1b   : > { %534 = vset.pattern.permute.xlu0 %v627_v0  ;;  %v473_v3 = vld [vmem:[%s192_s18 + $0x14] sm:$0xf]  ;;  %v461_v4 = vor.u32 %v474_v2, %v460_v1  ;;  %v462_v5 = vld [vmem:[%s192_s18 + $0x18] sm:$0xf0]  ;;  %v452_v6 = vld [vmem:[%s192_s18] sm:$0xf] }
  0x1c   : > { %v472_v7 = vld [vmem:[%s192_s18 + $0x4] sm:$0xf0]  ;;  %v465_v8 = vor.u32 %v473_v3, %v462_v5  ;;  %v471_v9 = vld [vmem:[%s192_s18 + $0x4] sm:$0xf]  ;;  %v454_v10 = vld [vmem:[%s192_s18 + $0x8] sm:$0xf0] }
  0x1d   : > { %277 = vmatpush.bf16.msra.mxu0 %v461_v4  ;;  %v453_v11 = vor.u32 %v472_v7, %v452_v6  ;;  %v241_v12 = vld [vmem:[%s748_s2] sm:$0xff]  ;;  %v457_v13 = vor.u32 %v471_v9, %v454_v10  ;;  %vm267_vm0 = vcmask 261120   ;;  %vm234_vm1 = vcmask 7168   ;;  %p223_p13 = scmp.lt.s32.totalorder %s615_s15, 1 }
  0x1e   : > { %290 = vmatpush.bf16.msra.mxu1 %v465_v8  ;;  %244 = vperm.xlu0 %534, %v241_v12   ;;  %v236_v14 = vld [vmem:[%s747_s1] sm:$0xf]  ;;  %v628_v38 = vmov 0.0  }
  0x1f   : > { %235 = vst.msk [vmem:[#allocation2] sm:$0xff] %vm234_vm1, %v628_v38  ;;  %s760_s15 = smov (!%p223_p13, %s615_s15), 1 }
  0x20   : > { %s449_s25 = sshll.u32 %s760_s15, 3 }
  0x21   : > { %278 = vmatpush.bf16.msra.mxu0 %v453_v11  ;;  %s228_s28 = scalar_lea.vmem %s749_s3, %s449_s25 }
  0x22   : > { %291 = vmatpush.bf16.msra.mxu1 %v457_v13 }
  0x24   : > { %466 = vmatmul.msk.bf16.vlgmr.msra.gmra.mxu0 %vm267_vm0, %v236_v14 }
  0x25   : > { %467 = vmatmul.msk.bf16.vlgmr.msra.gmra.mxu1 %vm267_vm0, %v236_v14 }
  0x26   : > { %v331_v58 = vld [vmem:[#allocation2] sm:$0xff] }
  0x90   : > { %v245_v15 = vpop.permute.xlu0 %244 }
  0xa1   : > { %v280_v16 = vpop.f32.mrf.mxu0 }
  0xa2   : > { %v281_v17 = vadd.f32 %v280_v16, %v245_v15  ;;  %v293_v18 = vpop.f32.mrf.mxu1 }
  0xa3   : > { %v294_v19 = vadd.f32 %v293_v18, %v245_v15 }
  0xa4   : > { %v297_v20 = vrot.slane %v281_v17, 4 }
  0xa5   : > { %v303_v21 = vrot.slane %v294_v19, 4 }
  0xa6   : > { %v298_v22 = vmax.f32 %v281_v17, %v297_v20 }
  0xa7   : > { %v304_v23 = vmax.f32 %v294_v19, %v303_v21 }
  0xa8   : > { %v299_v24 = vrot.slane %v298_v22, 2 }
  0xa9   : > { %v305_v25 = vrot.slane %v304_v23, 2  ;;  %v282_v26 = vpop.f32.mrf.mxu0 }
  0xaa   : > { %v300_v27 = vmax.f32 %v298_v22, %v299_v24  ;;  %v295_v28 = vpop.f32.mrf.mxu1 }
  0xab   : > { %v306_v29 = vmax.f32 %v304_v23, %v305_v25 }
  0xac   : > { %v301_v30 = vrot.slane %v300_v27, 1 }
  0xad   : > { %v307_v31 = vrot.slane %v306_v29, 1 }
  0xae   : > { %v302_v32 = vmax.f32 %v300_v27, %v301_v30 }
  0xaf   : > { %v308_v33 = vmax.f32 %v306_v29, %v307_v31 }
  0xb0   : > { %v309_v34 = vsub.f32 %v281_v17, %v302_v32 }
  0xb1   : > { %v310_v35 = vsub.f32 %v294_v19, %v308_v33 }
  0xb2   : > { %v311_v36 = vmul.f32 1.442695, %v309_v34 }
  0xb3   : > { %v313_v37 = vmul.f32 1.442695, %v310_v35 }
  0xb4   : > { %535 = vpow2.f32 %v311_v36 }
  0xb5   : > { %537 = vpow2.f32 %v313_v37 }
  0xba   : > { %v536_v39 = vpop.eup %535 }
  0xbb   : > { %v538_v40 = vpop.eup %537  ;;  %v315_v41 = vrot.slane %v536_v39, 4 }
  0xbc   : > { %v321_v42 = vrot.slane %v538_v40, 4 }
  0xbd   : > { %v316_v43 = vadd.f32 %v536_v39, %v315_v41 }
  0xbe   : > { %v322_v44 = vadd.f32 %v538_v40, %v321_v42 }
  0xbf   : > { %v317_v45 = vrot.slane %v316_v43, 2 }
  0xc0   : > { %v323_v46 = vrot.slane %v322_v44, 2 }
  0xc1   : > { %v318_v47 = vadd.f32 %v317_v45, %v316_v43 }
  0xc2   : > { %v324_v48 = vadd.f32 %v323_v46, %v322_v44 }
  0xc3   : > { %v319_v49 = vrot.slane %v318_v47, 1 }
  0xc4   : > { %v325_v50 = vrot.slane %v324_v48, 1 }
  0xc5   : > { %v320_v51 = vadd.f32 %v319_v49, %v318_v47 }
  0xc6   : > { %v326_v52 = vadd.f32 %v325_v50, %v324_v48 }
  0xc7   : > { %539 = vrcp.f32 %v320_v51 }
  0xc8   : > { %541 = vrcp.f32 %v326_v52 }
  0xcd   : > { %v540_v53 = vpop.eup %539 }
  0xce   : > { %v542_v54 = vpop.eup %541  ;;  %v329_v55 = vmul.f32 %v540_v53, %v536_v39 }
  0xcf   : > { %v330_v56 = vmul.f32 %v542_v54, %v538_v40 }
  0xd1   : > { %v332_v57 = vadd.f32 %v330_v56, %v329_v55 }
  0xd3   : > { %333 = vadd.xlane.f32.xlu0 %v332_v57 }
 0x146   : > { %v334_v59 = vpop.xlane.xlu0 %333 }
 0x147   : > { %v335_v60 = vadd.f32 %v334_v59, %v331_v58 }
 0x149   : > { %337 = vst.msk [vmem:[#allocation2] sm:$0xff] %vm234_vm1, %v335_v60 }
 0x150   : > { %v341_v61 = vld [vmem:[#allocation2] sm:$0xff] }
 0x151   : > { %v342_v62 = vmul.f32 0.00390625, %v341_v61 }
 0x153   : > { %343 = vst.msk [vmem:[%s228_s28] sm:$0xff] %vm234_vm1, %v342_v62 }
 0x154 PF: > { %s16_s17 = sadd.s32 1, %s623_s17   ;;  %s752_s12 = smov %s607_s13 }
 0x155   : > { %p13_p0 = scmp.ge.s32.totalorder %s16_s17, 4   ;;  %s753_s13 = smov %s611_s14 }
 0x156   : > { %s754_s14 = smov %s698_s24  ;;  %s755_s15 = smov %s619_s16 }
 0x157   : > { %s756_s16 = smov %s758_s19  ;;  %15 = sbr.rel (!%p13_p0) target bundleno = 4 (0x4), region = 80 }
 0x15c   :  { %371 = vsyncpa [#allocation4], 1 }
 0x15d   :  { %373 = vsyncpa [#allocation4 + $0x1], 1 }

</bundles_post_ra>
